<compile_context>
chip_gen: v6e
topology: v6e:2x2x1
jax: 0.10.0
libtpu: 0.0.40
codegen_flags: <defaults>
</compile_context>

<pallas_src>
import jax
import jax.numpy as jnp
from jax.experimental import pallas as pl
from jax.experimental.pallas import tpu as pltpu


def _round_up(x, m):
    return (x + m - 1) // m * m


def bin_linear_kernel(x_ref, w_ref, scale_ref, o_ref, acc_ref):
    k = pl.program_id(2)

    @pl.when(k == 0)
    def _():
        acc_ref[...] = jnp.zeros_like(acc_ref)

    x = x_ref[...]                                  # (TM, TK) bf16
    w = w_ref[...].astype(x.dtype)                  # (TK, TN) int8 -> bf16 (+/-1/0 exact)

    # Canonical contraction (K of x with K of w): no transpose in the lowering.
    acc_ref[...] += jax.lax.dot_general(
        x, w,
        dimension_numbers=(((1,), (0,)), ((), ())),
        preferred_element_type=jnp.float32,
    )                                               # (TM, TN) f32

    @pl.when(k == pl.num_programs(2) - 1)
    def _():
        # Apply the per-output-column scale to the (TM, TN) accumulator instead
        # of to the (out, in) weight: distributive over the contraction.
        scale = scale_ref[...]                      # (1, TN) f32, broadcasts
        o_ref[...] = (acc_ref[...] * scale).astype(o_ref.dtype)


def bin_linear(x, weights_flat, in_features, out_features,
               *, tm=None, tn=512, tk=1024):
    """x: (B, in_features) float; weights_flat: (out_features*in_features, 1)."""
    B = x.shape[0]
    out_dtype = x.dtype
    w = weights_flat.reshape(out_features, in_features)

    # Per-output scale, hoisted out of the hot loop: (1, out) f32 row.
    scale_row = jnp.mean(jnp.abs(w), axis=1, keepdims=True).T.astype(jnp.float32)

    # Pre-binarize + pre-transpose the weights once: int8 signs laid out (K, N).
    wq = jnp.sign(w).astype(jnp.int8).T             # (in_features, out_features)

    # bf16 activations -> native MXU rate, half the activation DMA.
    x_bf = x.astype(jnp.bfloat16)

    # Tile sizes: lane-dense, 256-aligned N/K; TM sublane-aligned (mult of 8).
    if tm is None:
        tm = 512 if B >= 512 else 256
    TM = min(tm, _round_up(B, 8))
    TN = min(tn, _round_up(out_features, 256))
    TK = min(tk, _round_up(in_features, 256))

    M_pad = _round_up(B, TM)
    N_pad = _round_up(out_features, TN)
    K_pad = _round_up(in_features, TK)

    # v7x has 2 TensorCores and only "parallel" axes are sharded across them:
    # if the (M, N) grid collapses to one block, split N (then M) when possible.
    if (M_pad // TM) * (N_pad // TN) < 2:
        if out_features > 256:
            TN = 256
            N_pad = _round_up(out_features, TN)
        elif B > 8:
            TM = _round_up((B + 1) // 2, 8)
            M_pad = _round_up(B, TM)

    x_p = jnp.pad(x_bf, ((0, M_pad - B), (0, K_pad - in_features)))
    w_p = jnp.pad(wq, ((0, K_pad - in_features), (0, N_pad - out_features)))
    s_p = jnp.pad(scale_row, ((0, 0), (0, N_pad - out_features)))

    grid = (M_pad // TM, N_pad // TN, K_pad // TK)
    m_tiles, n_tiles, _ = grid

    # Cost estimate reflecting actual dtypes and re-reads (weights streamed once
    # per M tile, activations once per N tile).
    out_itemsize = jnp.dtype(out_dtype).itemsize
    cost = pl.CostEstimate(
        flops=int(2 * B * out_features * in_features),
        transcendentals=0,
        bytes_accessed=int(
            2 * M_pad * K_pad * n_tiles            # bf16 activations
            + 1 * K_pad * N_pad * m_tiles          # int8 sign weights
            + out_itemsize * M_pad * N_pad         # output
            + 4 * N_pad * m_tiles * n_tiles        # scale row
        ),
    )

    # VMEM: scoped limit sized to the real double-buffered footprint + headroom.
    vmem_need = (2 * TM * TK * 2                   # x tiles (bf16, double-buffered)
                 + 2 * TK * TN * 1                 # weight tiles (int8, double-buffered)
                 + 2 * TN * 4                      # scale tiles
                 + 2 * TM * TN * out_itemsize      # output tiles
                 + TM * TN * 4)                    # f32 accumulator scratch
    vmem_limit = int(min(max(2 * vmem_need, 16 * 1024 * 1024), 40 * 1024 * 1024))

    out_padded = pl.pallas_call(
        bin_linear_kernel,
        out_shape=jax.ShapeDtypeStruct((M_pad, N_pad), out_dtype),
        grid_spec=pltpu.PrefetchScalarGridSpec(
            num_scalar_prefetch=0,
            grid=grid,
            in_specs=[
                pl.BlockSpec((TM, TK), lambda i, j, k: (i, k)),   # x tile (bf16)
                # TODO(synk): on v5e, sweep pipeline_mode=pl.Buffered(3) on the
                # weight spec to further hide weight DMA behind lower HBM BW.
                pl.BlockSpec((TK, TN), lambda i, j, k: (k, j)),   # sign tile (int8, pre-transposed)
                pl.BlockSpec((1, TN), lambda i, j, k: (0, j)),    # scale row (f32)
            ],
            out_specs=pl.BlockSpec((TM, TN), lambda i, j, k: (i, j)),
            scratch_shapes=[pltpu.VMEM((TM, TN), jnp.float32)],
        ),
        compiler_params=pltpu.CompilerParams(
            dimension_semantics=("parallel", "parallel", "arbitrary"),
            vmem_limit_bytes=vmem_limit,
        ),
        cost_estimate=cost,
    )(x_p, w_p, s_p)

    return out_padded[:B, :out_features]


if __name__ == "__main__":
    # Small shapes consistent with the module: BinLinear(in_features=32, out_features=16)
    B, in_features, out_features = 8, 32, 16

    key = jax.random.PRNGKey(0)
    kx, kw = jax.random.split(key)

    x = jax.random.normal(kx, (B, in_features), dtype=jnp.float32)
    # deterministic init matching torch.rand((out*in, 1)) * 0.32 -> uniform [0, 0.32)
    weights_flat = jax.random.uniform(kw, (out_features * in_features, 1),
                                      dtype=jnp.float32) * 0.32

    y = bin_linear(x, weights_flat, in_features, out_features)
    y = jax.block_until_ready(y)

    # pure-JAX reference (activations routed through bf16 like the kernel).
    w = weights_flat.reshape(out_features, in_features)
    scale = jnp.mean(jnp.abs(w), axis=1, keepdims=True)
    bw = scale * jnp.sign(w)
    x_bf = x.astype(jnp.bfloat16).astype(jnp.float32)
    y_ref = jnp.dot(x_bf, bw.T, precision=jax.lax.Precision.HIGHEST)
    y_ref_f32 = jnp.dot(x, bw.T, precision=jax.lax.Precision.HIGHEST)

    assert y.shape == (B, out_features)
    assert jnp.allclose(y, y_ref, atol=1e-3, rtol=1e-3)
    # also close to the exact f32 reference (bf16 activation rounding only)
    assert jnp.allclose(y, y_ref_f32, atol=5e-2, rtol=5e-2)

    print("KERNEL_OK")
</pallas_src>

<mosaic_0001>
module attributes {stable_mosaic.version = 11 : i64} {
  func.func @bin_linear_kernel(%arg0: i32, %arg1: i32, %arg2: i32, %arg3: memref<8x256xbf16, #tpu.memory_space<vmem>>, %arg4: memref<256x256xi8, #tpu.memory_space<vmem>>, %arg5: memref<1x256xf32, #tpu.memory_space<vmem>>, %arg6: memref<8x256xf32, #tpu.memory_space<vmem>>, %arg7: memref<8x256xf32, #tpu.memory_space<vmem>>) attributes {dimension_semantics = [#tpu.dimension_semantics<parallel>, #tpu.dimension_semantics<parallel>, #tpu.dimension_semantics<arbitrary>], iteration_bounds = array<i64: 1, 1, 1>, scalar_prefetch = 0 : i64, scratch_operands = 1 : i64, tpu.core_type = #tpu.core_type<tc>, window_params = [{transform_indices = @transform_0, window_bounds = array<i64: 8, 256>}, {transform_indices = @transform_1, window_bounds = array<i64: 256, 256>}, {transform_indices = @transform_2, window_bounds = array<i64: 1, 256>}, {transform_indices = @transform_3, window_bounds = array<i64: 8, 256>}]} {
    %c0_i32 = arith.constant 0 : i32
    %0 = arith.cmpi eq, %arg2, %c0_i32 : i32
    %1 = arith.extui %0 : i1 to i32
    %c0_i32_0 = arith.constant 0 : i32
    %2 = arith.cmpi ne, %1, %c0_i32_0 : i32
    scf.if %2 {
      %cst_10 = arith.constant 0.000000e+00 : f32
      %13 = vector.broadcast %cst_10 : f32 to vector<8x256xf32>
      %c0_11 = arith.constant 0 : index
      %c0_12 = arith.constant 0 : index
      %14 = vector.load %arg7[%c0_11, %c0_12] : memref<8x256xf32, #tpu.memory_space<vmem>>, vector<8x256xf32>
      tpu.vector_store %arg7[%c0_11, %c0_12], %13 {strides = array<i32>} : memref<8x256xf32, #tpu.memory_space<vmem>>, vector<8x256xf32>,
    } else {
    }
    %c0 = arith.constant 0 : index
    %c0_1 = arith.constant 0 : index
    %3 = vector.load %arg3[%c0, %c0_1] : memref<8x256xbf16, #tpu.memory_space<vmem>>, vector<8x256xbf16>
    %c0_2 = arith.constant 0 : index
    %c0_3 = arith.constant 0 : index
    %4 = vector.load %arg4[%c0_2, %c0_3] : memref<256x256xi8, #tpu.memory_space<vmem>>, vector<256x256xi8>
    %5 = arith.sitofp %4 : vector<256x256xi8> to vector<256x256xbf16>
    %c0_4 = arith.constant 0 : index
    %c0_5 = arith.constant 0 : index
    %6 = vector.load %arg7[%c0_4, %c0_5] : memref<8x256xf32, #tpu.memory_space<vmem>>, vector<8x256xf32>
    %cst = arith.constant dense<0.000000e+00> : vector<8x256xf32>
    %7 = tpu.matmul %3, %5, %cst {dimension_numbers = #tpu.dot_dimension_numbers<[1], [0], [0], [1], [0, 0, 1, 1], [], []>} : vector<8x256xbf16>, vector<256x256xbf16>, vector<8x256xf32> -> vector<8x256xf32>
    %8 = arith.addf %6, %7 : vector<8x256xf32>
    %c0_6 = arith.constant 0 : index
    %c0_7 = arith.constant 0 : index
    %9 = vector.load %arg7[%c0_6, %c0_7] : memref<8x256xf32, #tpu.memory_space<vmem>>, vector<8x256xf32>
    tpu.vector_store %arg7[%c0_6, %c0_7], %8 {strides = array<i32>} : memref<8x256xf32, #tpu.memory_space<vmem>>, vector<8x256xf32>,
    %c0_i32_8 = arith.constant 0 : i32
    %10 = arith.cmpi eq, %arg2, %c0_i32_8 : i32
    %11 = arith.extui %10 : i1 to i32
    %c0_i32_9 = arith.constant 0 : i32
    %12 = arith.cmpi ne, %11, %c0_i32_9 : i32
    scf.if %12 {
      %c0_10 = arith.constant 0 : index
      %c0_11 = arith.constant 0 : index
      %13 = vector.load %arg5[%c0_10, %c0_11] : memref<1x256xf32, #tpu.memory_space<vmem>>, vector<1x256xf32>
      %c0_12 = arith.constant 0 : index
      %c0_13 = arith.constant 0 : index
      %14 = vector.load %arg7[%c0_12, %c0_13] : memref<8x256xf32, #tpu.memory_space<vmem>>, vector<8x256xf32>
      %15 = vector.broadcast %13 : vector<1x256xf32> to vector<8x256xf32>
      %16 = arith.mulf %14, %15 : vector<8x256xf32>
      %c0_14 = arith.constant 0 : index
      %c0_15 = arith.constant 0 : index
      %17 = vector.load %arg6[%c0_14, %c0_15] : memref<8x256xf32, #tpu.memory_space<vmem>>, vector<8x256xf32>
      tpu.vector_store %arg6[%c0_14, %c0_15], %16 {strides = array<i32>} : memref<8x256xf32, #tpu.memory_space<vmem>>, vector<8x256xf32>,
    } else {
    }
    return
  }
  func.func @transform_0(%arg0: i32, %arg1: i32, %arg2: i32) -> (i32, i32) {
    %c0_i32 = arith.constant 0 : i32
    return %arg0, %arg2 : i32, i32
  }
  func.func @transform_1(%arg0: i32, %arg1: i32, %arg2: i32) -> (i32, i32) {
    %c0_i32 = arith.constant 0 : i32
    return %arg2, %arg1 : i32, i32
  }
  func.func @transform_2(%arg0: i32, %arg1: i32, %arg2: i32) -> (i32, i32) {
    %c0_i32 = arith.constant 0 : i32
    %c0_i32_0 = arith.constant 0 : i32
    return %c0_i32, %arg1 : i32, i32
  }
  func.func @transform_3(%arg0: i32, %arg1: i32, %arg2: i32) -> (i32, i32) {
    %c0_i32 = arith.constant 0 : i32
    return %arg0, %arg1 : i32, i32
  }
}

</mosaic_0001>

<bundles_post_ra>
// kernel: tpu_custom_call.1
= control target key start
LH: loop header
LB: loop body
LE: loop exit
PB: predicated region body
PF: predicated region fallthrough
CT: control target
= control target key end

     0   :  { %8 = vsyncpa [#allocation4], 0  ;;  %s305_s0 = inlined_call_operand.hbm [shape: bf16[8,256], index: 0, kind: input, shape index: {}]   ;;  %s306_s1 = inlined_call_operand.hbm [shape: s8[256,256], index: 1, kind: input, shape index: {}]   ;;  %s307_s2 = inlined_call_operand.vmem [shape: f32[1,256], index: 2, kind: input, shape index: {}]   ;;  %s308_s3 = inlined_call_operand.hbm [shape: f32[8,256], index: 3, kind: output, shape index: {}]  }
   0x1   :  { %9 = vsyncpa [#allocation7], 0 }
   0x2   :  { %10 = vsyncpa [#allocation5], 0  ;;  %s262_s12 = smov [#allocation3]   ;;  %s263_s14 = smov [#allocation6]  }
   0x3   :  { %s17_s13 = sshll.u32 %s262_s12, 4  ;;  %s26_s15 = sshll.u32 %s263_s14, 4  ;;  %s18_s13 = int_to_ptr.vmem [resolvable:$true] %s17_s13  ;;  %s27_s15 = int_to_ptr.vmem [resolvable:$true] %s26_s15 }
   0x4   :  { %s204_s16 = scalar_lea.vmem %s18_s13, 128  ;;  %p209_p1 = scmp.lt.s32.totalorder %s18_s13, %s18_s13 }
   0x5   :  { %p205_p0 = scmp.ne.s32.totalorder %s18_s13, %s204_s16  ;;  %p210_p2 = scmp.lt.s32.totalorder %s204_s16, %s204_s16 }
   0x7   :  { %p211_p3 = por %p210_p2, %p209_p1 }
   0x9   :  { %p212_p4 = pnand %p211_p3, %p205_p0 }
   0xb   :  { %215 = shalt.err (!%p212_p4)
}
   0xc   :  { %20 = dma.hbm_to_vmem [thread:$0]  %s305_s0, 128, %s18_s13, [#allocation4]  }
   0xd   :  { %s224_s19 = scalar_lea.vmem %s27_s15, 2048  ;;  %p229_p6 = scmp.lt.s32.totalorder %s27_s15, %s27_s15 }
   0xe   :  { %p225_p5 = scmp.ne.s32.totalorder %s27_s15, %s224_s19  ;;  %p230_p7 = scmp.lt.s32.totalorder %s224_s19, %s224_s19 }
  0x10   :  { %p231_p8 = por %p230_p7, %p229_p6 }
  0x12   :  { %p232_p9 = pnand %p231_p8, %p225_p5 }
  0x14   :  { %235 = shalt.err (!%p232_p9)
}
  0x15   :  { %s264_s20 = smov 256   ;;  %s265_s21 = smov 16  }
  0x16   :  { %32 = dma.hbm_to_vmem [thread:$0]  %s306_s1, 2048, %s27_s15, [#allocation7], %s264_s20, %s264_s20, %s265_s21  }
  0x17   :  { %256 = dma.done.wait [#allocation4], 128  }
  0x18   :  { %257 = vsyncadd [#allocation4], 4294967168 }
  0x19   :  { %258 = dma.done.wait [#allocation7], 2048  }
  0x1a   :  { %259 = vsyncadd [#allocation7], 4294965248  ;;  %v55_v0 = vld [vmem:[#allocation6 + $0x38] sm:$0xff]  ;;  %v54_v1 = vld [vmem:[#allocation6 + $0x30] sm:$0xff]  ;;  %v157_v51 = vlaneseq  ;;  %s266_s24 = smov [#allocation8]  }
  0x1b   :  { %v77_v2 = vunpack.c.l.s8.bf16 %v55_v0  ;;  %v79_v3 = vunpack.c.h.s8.bf16 %v55_v0  ;;  %v78_v4 = vunpack.c.h.s8.bf16 %v54_v1  ;;  %v53_v5 = vld [vmem:[#allocation6 + $0x28] sm:$0xff]  ;;  %v76_v6 = vunpack.c.l.s8.bf16 %v54_v1  ;;  %v52_v8 = vld [vmem:[#allocation6 + $0x20] sm:$0xff]  ;;  %v293_v9 = vld [vmem:[#allocation3] sm:$0xff]  ;;  %s177_s25 = sshll.u32 %s266_s24, 4  ;;  %s178_s25 = int_to_ptr.vmem [resolvable:$true] %s177_s25 }
  0x1c   :  { %v75_v7 = vunpack.c.h.s8.bf16 %v53_v5  ;;  %v74_v10 = vunpack.c.h.s8.bf16 %v52_v8  ;;  %v73_v11 = vunpack.c.l.s8.bf16 %v53_v5  ;;  %v188_v12 = vcombine.high %v293_v9, %v293_v9  ;;  %v51_v13 = vld [vmem:[#allocation6 + $0x18] sm:$0xff]  ;;  %v50_v16 = vld [vmem:[#allocation6 + $0x10] sm:$0xff]  ;;  %v49_v19 = vld [vmem:[#allocation6 + $0x8] sm:$0xff]  ;;  %s236_s26 = scalar_lea.vmem %s178_s25, 256  ;;  %p241_p11 = scmp.lt.s32.totalorder %s178_s25, %s178_s25 }
  0x1d   :  { %105 = vmatprep.subr.bf16.mxu0 %v79_v3  ;;  %v72_v14 = vunpack.c.l.s8.bf16 %v52_v8  ;;  %v71_v15 = vunpack.c.h.s8.bf16 %v51_v13  ;;  %v70_v17 = vunpack.c.h.s8.bf16 %v50_v16  ;;  %v69_v18 = vunpack.c.l.s8.bf16 %v51_v13  ;;  %v48_v22 = vld [vmem:[#allocation6] sm:$0xff]  ;;  %v63_v25 = vld [vmem:[#allocation6 + $0x78] sm:$0xff]  ;;  %v62_v28 = vld [vmem:[#allocation6 + $0x70] sm:$0xff]  ;;  %p237_p10 = scmp.ne.s32.totalorder %s178_s25, %s236_s26  ;;  %p242_p12 = scmp.lt.s32.totalorder %s236_s26, %s236_s26 }
  0x1e   :  { %106 = vmatpush1.bf16.msra.mxu0 %v78_v4  ;;  %137 = vmatprep.mubr.bf16.mxu0 %v188_v12  ;;  %v68_v20 = vunpack.c.l.s8.bf16 %v50_v16  ;;  %v67_v21 = vunpack.c.h.s8.bf16 %v49_v19  ;;  %v66_v23 = vunpack.c.h.s8.bf16 %v48_v22  ;;  %v65_v24 = vunpack.c.l.s8.bf16 %v49_v19  ;;  %v61_v31 = vld [vmem:[#allocation6 + $0x68] sm:$0xff]  ;;  %v60_v34 = vld [vmem:[#allocation6 + $0x60] sm:$0xff]  ;;  %v59_v37 = vld [vmem:[#allocation6 + $0x58] sm:$0xff] }
  0x1f   :  { %107 = vmatprep.subr.bf16.mxu0 %v77_v2  ;;  %v64_v26 = vunpack.c.l.s8.bf16 %v48_v22  ;;  %v95_v27 = vunpack.c.h.s8.bf16 %v63_v25  ;;  %v94_v29 = vunpack.c.h.s8.bf16 %v62_v28  ;;  %v93_v30 = vunpack.c.l.s8.bf16 %v63_v25  ;;  %v58_v40 = vld [vmem:[#allocation6 + $0x50] sm:$0xff]  ;;  %v57_v43 = vld [vmem:[#allocation6 + $0x48] sm:$0xff]  ;;  %v56_v46 = vld [vmem:[#allocation6 + $0x40] sm:$0xff]  ;;  %p243_p13 = por %p242_p12, %p241_p11 }
  0x20   :  { %v92_v32 = vunpack.c.l.s8.bf16 %v62_v28  ;;  %v91_v33 = vunpack.c.h.s8.bf16 %v61_v31  ;;  %v90_v35 = vunpack.c.h.s8.bf16 %v60_v34  ;;  %v89_v36 = vunpack.c.l.s8.bf16 %v61_v31  ;;  %v153_v54 = vld [vmem:[%s307_s2] sm:$0x3] }
  0x21   :  { %v88_v38 = vunpack.c.l.s8.bf16 %v60_v34  ;;  %v87_v39 = vunpack.c.h.s8.bf16 %v59_v37  ;;  %v86_v41 = vunpack.c.h.s8.bf16 %v58_v40  ;;  %v85_v42 = vunpack.c.l.s8.bf16 %v59_v37  ;;  %p244_p0 = pnand %p243_p13, %p237_p10 }
  0x22   :  { %108 = vmatpush1.bf16.msra.mxu0 %v76_v6  ;;  %v84_v44 = vunpack.c.l.s8.bf16 %v58_v40  ;;  %v83_v45 = vunpack.c.h.s8.bf16 %v57_v43  ;;  %v82_v47 = vunpack.c.h.s8.bf16 %v56_v46  ;;  %v81_v48 = vunpack.c.l.s8.bf16 %v57_v43 }
  0x23   :  { %109 = vmatprep.subr.bf16.mxu0 %v75_v7  ;;  %v80_v49 = vunpack.c.l.s8.bf16 %v56_v46  ;;  %v187_v50 = vcombine.low %v293_v9, %v293_v9  ;;  %v158_v52 = vshrl.u32 %v157_v51, 7 }
  0x25   :  { %v159_v53 = vsub.s32 0, %v158_v52  ;;  %v163_v55 = vsub.s32 1, %v158_v52 }
  0x26   :  { %110 = vmatpush1.bf16.msra.mxu0 %v74_v10 }
  0x27   :  { %111 = vmatprep.subr.bf16.mxu0 %v73_v11  ;;  %v160_v56 = vrot.slane %v153_v54, %v159_v53  ;;  %v164_v57 = vrot.slane %v153_v54, %v163_v55 }
  0x2a   :  { %112 = vmatpush1.bf16.msra.mxu0 %v72_v14 }
  0x2b   :  { %113 = vmatprep.subr.bf16.mxu0 %v71_v15 }
  0x2e   :  { %114 = vmatpush1.bf16.msra.mxu0 %v70_v17 }
  0x2f   :  { %115 = vmatprep.subr.bf16.mxu0 %v69_v18 }
  0x32   :  { %116 = vmatpush1.bf16.msra.mxu0 %v68_v20 }
  0x33   :  { %117 = vmatprep.subr.bf16.mxu0 %v67_v21 }
  0x36   :  { %118 = vmatpush1.bf16.msra.mxu0 %v66_v23 }
  0x37   :  { %119 = vmatprep.subr.bf16.mxu0 %v65_v24 }
  0x3a   :  { %120 = vmatpush1.bf16.msra.mxu0 %v64_v26 }
  0x3b   :  { %121 = vmatprep.subr.bf16.mxu0 %v95_v27 }
  0x3e   :  { %122 = vmatpush2.bf16.msra.mxu0 %v94_v29 }
  0x3f   :  { %123 = vmatprep.subr.bf16.mxu0 %v93_v30 }
  0x42   :  { %124 = vmatpush2.bf16.msra.mxu0 %v92_v32 }
  0x43   :  { %125 = vmatprep.subr.bf16.mxu0 %v91_v33 }
  0x46   :  { %126 = vmatpush2.bf16.msra.mxu0 %v90_v35 }
  0x47   :  { %127 = vmatprep.subr.bf16.mxu0 %v89_v36 }
  0x4a   :  { %128 = vmatpush2.bf16.msra.mxu0 %v88_v38 }
  0x4b   :  { %129 = vmatprep.subr.bf16.mxu0 %v87_v39 }
  0x4e   :  { %130 = vmatpush2.bf16.msra.mxu0 %v86_v41 }
  0x4f   :  { %131 = vmatprep.subr.bf16.mxu0 %v85_v42 }
  0x52   :  { %132 = vmatpush2.bf16.msra.mxu0 %v84_v44 }
  0x53   :  { %133 = vmatprep.subr.bf16.mxu0 %v83_v45 }
  0x56   :  { %134 = vmatpush2.bf16.msra.mxu0 %v82_v47 }
  0x57   :  { %135 = vmatprep.subr.bf16.mxu0 %v81_v48 }
  0x5a   :  { %136 = vmatpush2.bf16.msra.mxu0 %v80_v49 }
  0x5d   :  { %138 = vmatmul.mubr.bf16.vlgmr.msra.gmra.mxu0 %v187_v50 }
 0x11d   :  { %v139_v58 = vpop.f32.mrf.mxu0 }
 0x11e   :  { %v167_v59 = vmul.f32 %v160_v56, %v139_v58 }
 0x11f   :  { %v141_v60 = vpop.f32.mrf.mxu0 }
 0x120   :  { %169 = vst [vmem:[#allocation8] sm:$0xff] %v167_v59  ;;  %v168_v61 = vmul.f32 %v164_v57, %v141_v60 }
 0x121   :  { %v143_v62 = vpop.f32.mrf.mxu0 }
 0x122   :  { %170 = vst [vmem:[#allocation8 + $0x8] sm:$0xff] %v168_v61 }
 0x123   :  { %v144_v63 = vpop.f32.mrf.mxu0 }
 0x124   :  { %247 = shalt.err (!%p244_p0)
}
 0x125   :  { %180 = dma.vmem_to_hbm [thread:$0]  %s178_s25, 256, %s308_s3, [#allocation5]  }
 0x126   :  { %260 = dma.done.wait [#allocation5], 256  }
 0x127   :  { %261 = vsyncadd [#allocation5], 4294967040 }
 0x128   :  { %184 = vsyncpa [#allocation4], 1 }
 0x129   :  { %185 = vsyncpa [#allocation7], 1 }
 0x12a   :  { %186 = vsyncpa [#allocation5], 1 }

</bundles_post_ra>
